<compile_context>
chip_gen: v6e
topology: v6e:2x2x1
jax: 0.10.0
libtpu: 0.0.40
codegen_flags: <defaults>
</compile_context>

<pallas_src>
import jax
import jax.numpy as jnp
import numpy as np
from jax.experimental import pallas as pl
from jax.experimental.pallas import tpu as pltpu

_EPS = 1e-5


def fused_mbconv_kernel(xtap_ref, w1_ref, w2_ref, res_ref,
                        g1_ref, be1_ref, g2_ref, be2_ref,
                        out_ref, acc_ref):
    k = pl.program_id(0)

    @pl.when(k == 0)
    def _():
        acc_ref[...] = jnp.zeros_like(acc_ref)

    # expand_conv: one 3x3 tap per grid step, (Cmid, Cin) x (Cin, NHW) on the
    # MXU; bf16 operands, f32 accumulation into persistent VMEM scratch.
    acc_ref[...] += jnp.dot(w1_ref[...], xtap_ref[...],
                            preferred_element_type=jnp.float32)

    @pl.when(k == pl.num_programs(0) - 1)
    def _():
        nhw = out_ref.shape[1]
        inv_nhw = 1.0 / nhw

        acc = acc_ref[...]                                  # (Cmid, NHW) f32
        # bn1 (training-mode, biased var): centered stats + gamma/rsqrt fold ->
        # per-element apply is a single multiply-add.
        mu1 = jnp.sum(acc, axis=1, keepdims=True) * inv_nhw
        xc1 = acc - mu1
        var1 = jnp.sum(xc1 * xc1, axis=1, keepdims=True) * inv_nhw
        scale1 = g1_ref[...] * jax.lax.rsqrt(var1 + _EPS)   # (Cmid, 1)
        h = xc1 * scale1 + be1_ref[...]
        # SiLU: sigmoid on the EUP, lane-dense multiply on the VPU.
        h = h * jax.nn.sigmoid(h)

        # project_conv: 1x1 conv == (Cout, Cmid) x (Cmid, NHW) matmul.
        y = jnp.dot(w2_ref[...], h.astype(jnp.bfloat16),
                    preferred_element_type=jnp.float32)      # (Cout, NHW) f32

        # bn2: same centered-stat + folded-scale treatment.
        mu2 = jnp.sum(y, axis=1, keepdims=True) * inv_nhw
        yc = y - mu2
        var2 = jnp.sum(yc * yc, axis=1, keepdims=True) * inv_nhw
        scale2 = g2_ref[...] * jax.lax.rsqrt(var2 + _EPS)    # (Cout, 1)

        # residual add from the exact f32 input + lane-dense f32 store
        # (last dim = NHW, multiple of 128 -> unmasked vst).
        out_ref[...] = yc * scale2 + be2_ref[...] + res_ref[...]


@jax.jit
def fused_mbconv(x_nchw, w1_oihw, gamma1, beta1, w2_oihw, gamma2, beta2):
    """FusedMBConv forward (expansion != 1, stride = 1, residual path)."""
    N, Cin, H, W = x_nchw.shape
    Cmid = w1_oihw.shape[0]
    Cout = w2_oihw.shape[0]
    NHW = N * H * W

    x = x_nchw.astype(jnp.float32)
    xpad = jnp.pad(x, ((0, 0), (0, 0), (1, 1), (1, 1)))       # (N, Cin, H+2, W+2)

    # Tap stack (channels-major, bf16): tap t = dy*3+dx, col = n*H*W + h*W + w.
    taps = [xpad[:, :, dy:dy + H, dx:dx + W]
            for dy in range(3) for dx in range(3)]            # 9 x (N, Cin, H, W)
    xtaps = jnp.stack(taps, axis=0)                           # (9, N, Cin, H, W)
    xtaps = jnp.transpose(xtaps, (0, 2, 1, 3, 4)).reshape(9, Cin, NHW)
    xtaps = xtaps.astype(jnp.bfloat16)

    # Weights: OIHW -> per-tap (9, Cmid, Cin) matching the tap ordering; 1x1 ->
    # (Cout, Cmid). bf16 MXU feeds.
    w1taps = jnp.transpose(w1_oihw, (2, 3, 0, 1)).reshape(9, Cmid, Cin)
    w1taps = w1taps.astype(jnp.bfloat16)
    w2f = w2_oihw.reshape(Cout, Cmid).astype(jnp.bfloat16)

    # Residual: exact f32, channels-major, lane-dense.
    res = jnp.transpose(x, (1, 0, 2, 3)).reshape(Cin, NHW)

    g1 = gamma1.reshape(Cmid, 1).astype(jnp.float32)
    be1 = beta1.reshape(Cmid, 1).astype(jnp.float32)
    g2 = gamma2.reshape(Cout, 1).astype(jnp.float32)
    be2 = beta2.reshape(Cout, 1).astype(jnp.float32)

    y = pl.pallas_call(
        fused_mbconv_kernel,
        out_shape=jax.ShapeDtypeStruct((Cout, NHW), jnp.float32),
        grid_spec=pltpu.PrefetchScalarGridSpec(
            num_scalar_prefetch=0,
            grid=(9,),                                        # 3x3 tap reduction
            in_specs=[
                pl.BlockSpec((None, Cin, NHW), lambda k: (k, 0, 0)),   # xtaps
                pl.BlockSpec((None, Cmid, Cin), lambda k: (k, 0, 0)),  # w1 taps
                pl.BlockSpec((Cout, Cmid), lambda k: (0, 0)),          # w2
                pl.BlockSpec((Cin, NHW), lambda k: (0, 0)),            # residual
                pl.BlockSpec((Cmid, 1), lambda k: (0, 0)),             # gamma1
                pl.BlockSpec((Cmid, 1), lambda k: (0, 0)),             # beta1
                pl.BlockSpec((Cout, 1), lambda k: (0, 0)),             # gamma2
                pl.BlockSpec((Cout, 1), lambda k: (0, 0)),             # beta2
            ],
            out_specs=pl.BlockSpec((Cout, NHW), lambda k: (0, 0)),
            scratch_shapes=[pltpu.VMEM((Cmid, NHW), jnp.float32)],
        ),
        compiler_params=pltpu.CompilerParams(
            dimension_semantics=("arbitrary",),               # tap axis = reduction
            vmem_limit_bytes=32 * 1024 * 1024,
        ),
    )(xtaps, w1taps, w2f, res, g1, be1, g2, be2)

    # (Cout, N*H*W) -> (N, Cout, H, W); tiny (8 KiB) transpose done once in XLA.
    return jnp.transpose(y.reshape(Cout, N, H, W), (1, 0, 2, 3))


def reference(x, w1, g1, b1, w2, g2, b2):
    """Pure-JAX NCHW reference matching the PyTorch forward (training-mode BN)."""
    def bn(z, g, b):
        mu = z.mean(axis=(0, 2, 3), keepdims=True)
        var = ((z - mu) ** 2).mean(axis=(0, 2, 3), keepdims=True)
        return ((z - mu) / jnp.sqrt(var + _EPS)
                * g[None, :, None, None] + b[None, :, None, None])

    y = jax.lax.conv_general_dilated(
        x, w1, (1, 1), ((1, 1), (1, 1)),
        dimension_numbers=('NCHW', 'OIHW', 'NCHW'))
    y = bn(y, g1, b1)
    y = y * jax.nn.sigmoid(y)
    y = jax.lax.conv_general_dilated(
        y, w2, (1, 1), ((0, 0), (0, 0)),
        dimension_numbers=('NCHW', 'OIHW', 'NCHW'))
    y = bn(y, g2, b2)
    return y + x


if __name__ == "__main__":
    key = jax.random.PRNGKey(0)
    keys = iter(jax.random.split(key, 10))

    # FusedMBConv(in_channels=4, out_channels=4, expansion=2, stride=1)
    N, Cin, H, W = 2, 4, 16, 16
    expansion, stride = 2, 1
    Cout = Cin
    Cmid = Cin * expansion

    x = jax.random.normal(next(keys), (N, Cin, H, W), jnp.float32)
    w1 = 0.1 * jax.random.normal(next(keys), (Cmid, Cin, 3, 3), jnp.float32)
    g1 = 1.0 + 0.1 * jax.random.normal(next(keys), (Cmid,), jnp.float32)
    b1 = 0.1 * jax.random.normal(next(keys), (Cmid,), jnp.float32)
    w2 = 0.1 * jax.random.normal(next(keys), (Cout, Cmid, 1, 1), jnp.float32)
    g2 = 1.0 + 0.1 * jax.random.normal(next(keys), (Cout,), jnp.float32)
    b2 = 0.1 * jax.random.normal(next(keys), (Cout,), jnp.float32)

    out = jax.block_until_ready(fused_mbconv(x, w1, g1, b1, w2, g2, b2))

    ref = reference(x, w1, g1, b1, w2, g2, b2)
    assert out.shape == ref.shape == (N, Cout, H, W)
    if not np.allclose(np.asarray(out), np.asarray(ref), atol=5e-2, rtol=5e-2):
        raise AssertionError("Pallas kernel does not match JAX reference")

    print("KERNEL_OK")
</pallas_src>

<mosaic_0001>
module attributes {stable_mosaic.version = 11 : i64} {
  func.func @fused_mbconv_kernel(%arg0: i32, %arg1: memref<1x4x512xbf16, #tpu.memory_space<vmem>>, %arg2: memref<1x8x4xbf16, #tpu.memory_space<vmem>>, %arg3: memref<4x8xbf16, #tpu.memory_space<vmem>>, %arg4: memref<4x512xf32, #tpu.memory_space<vmem>>, %arg5: memref<8x1xf32, #tpu.memory_space<vmem>>, %arg6: memref<8x1xf32, #tpu.memory_space<vmem>>, %arg7: memref<4x1xf32, #tpu.memory_space<vmem>>, %arg8: memref<4x1xf32, #tpu.memory_space<vmem>>, %arg9: memref<4x512xf32, #tpu.memory_space<vmem>>, %arg10: memref<8x512xf32, #tpu.memory_space<vmem>>) attributes {dimension_semantics = [#tpu.dimension_semantics<arbitrary>], iteration_bounds = array<i64: 9>, scalar_prefetch = 0 : i64, scratch_operands = 1 : i64, tpu.core_type = #tpu.core_type<tc>, window_params = [{transform_indices = @transform_0, window_bounds = array<i64: 1, 4, 512>}, {transform_indices = @transform_1, window_bounds = array<i64: 1, 8, 4>}, {pipeline_mode = #tpu.pipeline_mode<synchronous>, transform_indices = @transform_2, window_bounds = array<i64: 4, 8>}, {pipeline_mode = #tpu.pipeline_mode<synchronous>, transform_indices = @transform_3, window_bounds = array<i64: 4, 512>}, {pipeline_mode = #tpu.pipeline_mode<synchronous>, transform_indices = @transform_4, window_bounds = array<i64: 8, 1>}, {pipeline_mode = #tpu.pipeline_mode<synchronous>, transform_indices = @transform_5, window_bounds = array<i64: 8, 1>}, {pipeline_mode = #tpu.pipeline_mode<synchronous>, transform_indices = @transform_6, window_bounds = array<i64: 4, 1>}, {pipeline_mode = #tpu.pipeline_mode<synchronous>, transform_indices = @transform_7, window_bounds = array<i64: 4, 1>}, {pipeline_mode = #tpu.pipeline_mode<synchronous>, transform_indices = @transform_8, window_bounds = array<i64: 4, 512>}]} {
    %c0_i32 = arith.constant 0 : i32
    %0 = arith.cmpi eq, %arg0, %c0_i32 : i32
    %1 = arith.extui %0 : i1 to i32
    %c0_i32_0 = arith.constant 0 : i32
    %2 = arith.cmpi ne, %1, %c0_i32_0 : i32
    scf.if %2 {
      %cst_11 = arith.constant 0.000000e+00 : f32
      %14 = vector.broadcast %cst_11 : f32 to vector<8x512xf32>
      %c0_12 = arith.constant 0 : index
      %c0_13 = arith.constant 0 : index
      %15 = vector.load %arg10[%c0_12, %c0_13] : memref<8x512xf32, #tpu.memory_space<vmem>>, vector<8x512xf32>
      tpu.vector_store %arg10[%c0_12, %c0_13], %14 {strides = array<i32>} : memref<8x512xf32, #tpu.memory_space<vmem>>, vector<8x512xf32>,
    } else {
    }
    %c0 = arith.constant 0 : index
    %c0_1 = arith.constant 0 : index
    %3 = vector.load %arg10[%c0, %c0_1] : memref<8x512xf32, #tpu.memory_space<vmem>>, vector<8x512xf32>
    %c0_2 = arith.constant 0 : index
    %c0_3 = arith.constant 0 : index
    %c0_4 = arith.constant 0 : index
    %4 = vector.load %arg2[%c0_2, %c0_3, %c0_4] : memref<1x8x4xbf16, #tpu.memory_space<vmem>>, vector<1x8x4xbf16>
    %5 = vector.shape_cast %4 : vector<1x8x4xbf16> to vector<8x4xbf16>
    %c0_5 = arith.constant 0 : index
    %c0_6 = arith.constant 0 : index
    %c0_7 = arith.constant 0 : index
    %6 = vector.load %arg1[%c0_5, %c0_6, %c0_7] : memref<1x4x512xbf16, #tpu.memory_space<vmem>>, vector<1x4x512xbf16>
    %7 = vector.shape_cast %6 : vector<1x4x512xbf16> to vector<4x512xbf16>
    %cst = arith.constant dense<0.000000e+00> : vector<8x512xf32>
    %8 = tpu.matmul %5, %7, %cst {dimension_numbers = #tpu.dot_dimension_numbers<[1], [0], [0], [1], [0, 0, 1, 1], [], []>} : vector<8x4xbf16>, vector<4x512xbf16>, vector<8x512xf32> -> vector<8x512xf32>
    %9 = arith.addf %3, %8 : vector<8x512xf32>
    %c0_8 = arith.constant 0 : index
    %c0_9 = arith.constant 0 : index
    %10 = vector.load %arg10[%c0_8, %c0_9] : memref<8x512xf32, #tpu.memory_space<vmem>>, vector<8x512xf32>
    tpu.vector_store %arg10[%c0_8, %c0_9], %9 {strides = array<i32>} : memref<8x512xf32, #tpu.memory_space<vmem>>, vector<8x512xf32>,
    %c8_i32 = arith.constant 8 : i32
    %11 = arith.cmpi eq, %arg0, %c8_i32 : i32
    %12 = arith.extui %11 : i1 to i32
    %c0_i32_10 = arith.constant 0 : i32
    %13 = arith.cmpi ne, %12, %c0_i32_10 : i32
    scf.if %13 {
      %c0_11 = arith.constant 0 : index
      %c0_12 = arith.constant 0 : index
      %14 = vector.load %arg10[%c0_11, %c0_12] : memref<8x512xf32, #tpu.memory_space<vmem>>, vector<8x512xf32>
      %cst_13 = arith.constant dense<0.000000e+00> : vector<8xf32>
      %15 = vector.multi_reduction <add>, %14, %cst_13 [1] : vector<8x512xf32> to vector<8xf32>
      %16 = vector.shape_cast %15 : vector<8xf32> to vector<8x1xf32>
      %cst_14 = arith.constant 0.001953125 : f32
      %17 = vector.broadcast %cst_14 : f32 to vector<8x1xf32>
      %18 = arith.mulf %16, %17 : vector<8x1xf32>
      %19 = vector.broadcast %18 : vector<8x1xf32> to vector<8x512xf32>
      %20 = arith.subf %14, %19 : vector<8x512xf32>
      %21 = arith.mulf %20, %20 : vector<8x512xf32>
      %cst_15 = arith.constant dense<0.000000e+00> : vector<8xf32>
      %22 = vector.multi_reduction <add>, %21, %cst_15 [1] : vector<8x512xf32> to vector<8xf32>
      %23 = vector.shape_cast %22 : vector<8xf32> to vector<8x1xf32>
      %cst_16 = arith.constant 0.001953125 : f32
      %24 = vector.broadcast %cst_16 : f32 to vector<8x1xf32>
      %25 = arith.mulf %23, %24 : vector<8x1xf32>
      %c0_17 = arith.constant 0 : index
      %c0_18 = arith.constant 0 : index
      %26 = vector.load %arg5[%c0_17, %c0_18] : memref<8x1xf32, #tpu.memory_space<vmem>>, vector<8x1xf32>
      %cst_19 = arith.constant 9.99999974E-6 : f32
      %27 = vector.broadcast %cst_19 : f32 to vector<8x1xf32>
      %28 = arith.addf %25, %27 : vector<8x1xf32>
      %29 = math.rsqrt %28 : vector<8x1xf32>
      %30 = arith.mulf %26, %29 : vector<8x1xf32>
      %31 = vector.broadcast %30 : vector<8x1xf32> to vector<8x512xf32>
      %32 = arith.mulf %20, %31 : vector<8x512xf32>
      %c0_20 = arith.constant 0 : index
      %c0_21 = arith.constant 0 : index
      %33 = vector.load %arg6[%c0_20, %c0_21] : memref<8x1xf32, #tpu.memory_space<vmem>>, vector<8x1xf32>
      %34 = vector.broadcast %33 : vector<8x1xf32> to vector<8x512xf32>
      %35 = arith.addf %32, %34 : vector<8x512xf32>
      %36 = arith.negf %35 : vector<8x512xf32>
      %37 = math.exp %36 : vector<8x512xf32>
      %cst_22 = arith.constant 1.000000e+00 : f32
      %38 = vector.broadcast %cst_22 : f32 to vector<8x512xf32>
      %39 = arith.addf %38, %37 : vector<8x512xf32>
      %40 = arith.divf %38, %39 : vector<8x512xf32>
      %41 = arith.mulf %35, %40 : vector<8x512xf32>
      %c0_23 = arith.constant 0 : index
      %c0_24 = arith.constant 0 : index
      %42 = vector.load %arg3[%c0_23, %c0_24] : memref<4x8xbf16, #tpu.memory_space<vmem>>, vector<4x8xbf16>
      %43 = arith.truncf %41 : vector<8x512xf32> to vector<8x512xbf16>
      %cst_25 = arith.constant dense<0.000000e+00> : vector<4x512xf32>
      %44 = tpu.matmul %42, %43, %cst_25 {dimension_numbers = #tpu.dot_dimension_numbers<[1], [0], [0], [1], [0, 0, 1, 1], [], []>} : vector<4x8xbf16>, vector<8x512xbf16>, vector<4x512xf32> -> vector<4x512xf32>
      %cst_26 = arith.constant dense<0.000000e+00> : vector<4xf32>
      %45 = vector.multi_reduction <add>, %44, %cst_26 [1] : vector<4x512xf32> to vector<4xf32>
      %46 = vector.shape_cast %45 : vector<4xf32> to vector<4x1xf32>
      %cst_27 = arith.constant 0.001953125 : f32
      %47 = vector.broadcast %cst_27 : f32 to vector<4x1xf32>
      %48 = arith.mulf %46, %47 : vector<4x1xf32>
      %49 = vector.broadcast %48 : vector<4x1xf32> to vector<4x512xf32>
      %50 = arith.subf %44, %49 : vector<4x512xf32>
      %51 = arith.mulf %50, %50 : vector<4x512xf32>
      %cst_28 = arith.constant dense<0.000000e+00> : vector<4xf32>
      %52 = vector.multi_reduction <add>, %51, %cst_28 [1] : vector<4x512xf32> to vector<4xf32>
      %53 = vector.shape_cast %52 : vector<4xf32> to vector<4x1xf32>
      %cst_29 = arith.constant 0.001953125 : f32
      %54 = vector.broadcast %cst_29 : f32 to vector<4x1xf32>
      %55 = arith.mulf %53, %54 : vector<4x1xf32>
      %c0_30 = arith.constant 0 : index
      %c0_31 = arith.constant 0 : index
      %56 = vector.load %arg7[%c0_30, %c0_31] : memref<4x1xf32, #tpu.memory_space<vmem>>, vector<4x1xf32>
      %cst_32 = arith.constant 9.99999974E-6 : f32
      %57 = vector.broadcast %cst_32 : f32 to vector<4x1xf32>
      %58 = arith.addf %55, %57 : vector<4x1xf32>
      %59 = math.rsqrt %58 : vector<4x1xf32>
      %60 = arith.mulf %56, %59 : vector<4x1xf32>
      %61 = vector.broadcast %60 : vector<4x1xf32> to vector<4x512xf32>
      %62 = arith.mulf %50, %61 : vector<4x512xf32>
      %c0_33 = arith.constant 0 : index
      %c0_34 = arith.constant 0 : index
      %63 = vector.load %arg8[%c0_33, %c0_34] : memref<4x1xf32, #tpu.memory_space<vmem>>, vector<4x1xf32>
      %64 = vector.broadcast %63 : vector<4x1xf32> to vector<4x512xf32>
      %65 = arith.addf %62, %64 : vector<4x512xf32>
      %c0_35 = arith.constant 0 : index
      %c0_36 = arith.constant 0 : index
      %66 = vector.load %arg4[%c0_35, %c0_36] : memref<4x512xf32, #tpu.memory_space<vmem>>, vector<4x512xf32>
      %67 = arith.addf %65, %66 : vector<4x512xf32>
      %c0_37 = arith.constant 0 : index
      %c0_38 = arith.constant 0 : index
      %68 = vector.load %arg9[%c0_37, %c0_38] : memref<4x512xf32, #tpu.memory_space<vmem>>, vector<4x512xf32>
      tpu.vector_store %arg9[%c0_37, %c0_38], %67 {strides = array<i32>} : memref<4x512xf32, #tpu.memory_space<vmem>>, vector<4x512xf32>,
    } else {
    }
    return
  }
  func.func @transform_0(%arg0: i32) -> (i32, i32, i32) {
    %c0_i32 = arith.constant 0 : i32
    %c0_i32_0 = arith.constant 0 : i32
    %c0_i32_1 = arith.constant 0 : i32
    return %arg0, %c0_i32, %c0_i32_0 : i32, i32, i32
  }
  func.func @transform_1(%arg0: i32) -> (i32, i32, i32) {
    %c0_i32 = arith.constant 0 : i32
    %c0_i32_0 = arith.constant 0 : i32
    %c0_i32_1 = arith.constant 0 : i32
    return %arg0, %c0_i32, %c0_i32_0 : i32, i32, i32
  }
  func.func @transform_2(%arg0: i32) -> (i32, i32) {
    %c0_i32 = arith.constant 0 : i32
    %c0_i32_0 = arith.constant 0 : i32
    %c0_i32_1 = arith.constant 0 : i32
    return %c0_i32, %c0_i32_0 : i32, i32
  }
  func.func @transform_3(%arg0: i32) -> (i32, i32) {
    %c0_i32 = arith.constant 0 : i32
    %c0_i32_0 = arith.constant 0 : i32
    %c0_i32_1 = arith.constant 0 : i32
    return %c0_i32, %c0_i32_0 : i32, i32
  }
  func.func @transform_4(%arg0: i32) -> (i32, i32) {
    %c0_i32 = arith.constant 0 : i32
    %c0_i32_0 = arith.constant 0 : i32
    %c0_i32_1 = arith.constant 0 : i32
    return %c0_i32, %c0_i32_0 : i32, i32
  }
  func.func @transform_5(%arg0: i32) -> (i32, i32) {
    %c0_i32 = arith.constant 0 : i32
    %c0_i32_0 = arith.constant 0 : i32
    %c0_i32_1 = arith.constant 0 : i32
    return %c0_i32, %c0_i32_0 : i32, i32
  }
  func.func @transform_6(%arg0: i32) -> (i32, i32) {
    %c0_i32 = arith.constant 0 : i32
    %c0_i32_0 = arith.constant 0 : i32
    %c0_i32_1 = arith.constant 0 : i32
    return %c0_i32, %c0_i32_0 : i32, i32
  }
  func.func @transform_7(%arg0: i32) -> (i32, i32) {
    %c0_i32 = arith.constant 0 : i32
    %c0_i32_0 = arith.constant 0 : i32
    %c0_i32_1 = arith.constant 0 : i32
    return %c0_i32, %c0_i32_0 : i32, i32
  }
  func.func @transform_8(%arg0: i32) -> (i32, i32) {
    %c0_i32 = arith.constant 0 : i32
    %c0_i32_0 = arith.constant 0 : i32
    %c0_i32_1 = arith.constant 0 : i32
    return %c0_i32, %c0_i32_0 : i32, i32
  }
}

</mosaic_0001>

<bundles_post_ra>
// kernel: fused_mbconv.1
= control target key start
LH: loop header
LB: loop body
LE: loop exit
PB: predicated region body
PF: predicated region fallthrough
CT: control target
= control target key end

     0   :  { %s862_s27 = smov 0   ;;  %s927_s0 = inlined_call_operand.vmem [shape: bf16[9,4,512], index: 0, kind: input, shape index: {}]   ;;  %s928_s1 = inlined_call_operand.vmem [shape: bf16[9,8,4], index: 1, kind: input, shape index: {}]   ;;  %s929_s2 = inlined_call_operand.vmem [shape: bf16[4,8], index: 2, kind: input, shape index: {}]   ;;  %s930_s3 = inlined_call_operand.vmem [shape: f32[4,512], index: 3, kind: input, shape index: {}]   ;;  %s931_s4 = inlined_call_operand.vmem [shape: f32[8,1], index: 4, kind: input, shape index: {}]   ;;  %s932_s5 = inlined_call_operand.vmem [shape: f32[8,1], index: 5, kind: input, shape index: {}]   ;;  %s933_s6 = inlined_call_operand.vmem [shape: f32[4,1], index: 6, kind: input, shape index: {}]   ;;  %s934_s7 = inlined_call_operand.vmem [shape: f32[4,1], index: 7, kind: input, shape index: {}]   ;;  %s935_s8 = inlined_call_operand.vmem [shape: f32[4,512], index: 8, kind: output, shape index: {}]  }
   0x1 LB: > { %s868_s28 = sadd.s32 4294967295, %s811_s27   ;;  %p747_p0 = scmp.ge.s32.totalorder %s811_s27, 1  ;;  %s811_s27 = sphi %s862_s27, %s18_s27  }
   0x2   : > { %p266_p1 = scmp.lt.s32.totalorder %s811_s27, 10 }
   0x4   : > { %p267_p2 = pnand %p747_p0, %p266_p1 }
   0x5   : > { %p299_p3 = scmp.lt.s32.totalorder (!%p267_p2), %s868_s28, 8  ;;  %p751_p4 = scmp.ne.s32.totalorder (!%p267_p2), %s868_s28, 0 }
   0x6   : > { %270 = sbr.rel (%p267_p2) target bundleno = 1370 (0x55a), region = 52 }
   0xb   : > { %s300_s29 = scalar_select %p299_p3, %s868_s28, 8 }
   0xc   : > { %312 = sbr.rel (%p751_p4) target bundleno = 20 (0x14), region = 56 }
   0xd   : > { %s767_s30 = sshll.u32 %s300_s29, 3  ;;  %s750_s9 = sshll.u32 %s300_s29, 2 }
   0xe   : > { %s303_s12 = scalar_lea.vmem %s927_s0, %s767_s30  ;;  %s880_s15 = scalar_lea.vmem %s928_s1, %s750_s9 }
  0x11   : > { %v813_v0 = vmov 0.0  }
  0x12   : > { %313 = vst [vmem:[#allocation2 + $0x10] sm:$0xff] %v813_v0  ;;  %314 = vst [vmem:[#allocation2] sm:$0xff] %v813_v0 }
  0x13   : > { %315 = vst [vmem:[#allocation2 + $0x18] sm:$0xff] %v813_v0  ;;  %316 = vst [vmem:[#allocation2 + $0x8] sm:$0xff] %v813_v0 }
  0x14 PF: > { %v322_v1 = vld [vmem:[%s303_s12] sm:$0xff]  ;;  %v328_v2 = vlaneseq  ;;  %v814_v3 = vmov 1983009808   ;;  %v815_v5 = vmov 0   ;;  %vm345_vm0 = vcmask 1041408   ;;  %p756_p5 = scmp.ne.s32.totalorder %s868_s28, 8 }
  0x15   : > { %v326_v4 = vunpack.c.l.s4 %v814_v3  ;;  %390 = vmatprep.mubr.bf16.mxu0 %v815_v5  ;;  %431 = vmatprep.mubr.bf16.mxu1 %v815_v5  ;;  %v324_v8 = vcombine.high %v322_v1, %v322_v1  ;;  %v321_v16 = vld [vmem:[%s880_s15] sm:$0xf]  ;;  %vm341_vm1 = vcmask 31744  }
  0x16   : > { %v329_v6 = vshrl.u32 %v328_v2, 7 }
  0x17   : > { %v327_v7 = vunpack.c.0.s8 %v326_v4 }
  0x19   : > { %v330_v9 = vsub.s32 %v327_v7, %v329_v6  ;;  %v317_v17 = vld [vmem:[#allocation2 + $0x10] sm:$0xff]  ;;  %v318_v21 = vld [vmem:[#allocation2] sm:$0xff] }
  0x1a   : > { %v319_v18 = vld [vmem:[#allocation2 + $0x18] sm:$0xff]  ;;  %v320_v22 = vld [vmem:[#allocation2 + $0x8] sm:$0xff] }
  0x1b   : > { %v331_v10 = vrot.slane %v322_v1, %v330_v9  ;;  %v338_v11 = vrot.slane %v324_v8, %v330_v9 }
  0x1d   : > { %v339_v12 = vcombine.high %v331_v10, %v331_v10  ;;  %v340_v13 = vcombine.high %v338_v11, %v338_v11  ;;  %v347_v14 = vsel %vm345_vm0, %v331_v10, 0  ;;  %v353_v15 = vsel %vm345_vm0, %v338_v11, 0 }
  0x1f   : > { %752 = vmatprep.subr.msk.bf16.mxu0 %vm345_vm0, %v339_v12  ;;  %754 = vmatprep.subr.msk.bf16.mxu1 %vm345_vm0, %v340_v13 }
  0x20   : > { %373 = vmatpush1.bf16.msra.mxu0 %v347_v14  ;;  %414 = vmatpush1.bf16.msra.mxu1 %v353_v15 }
  0x23   : > { %753 = vmatmul.mubr.msk.bf16.vlgmr.msra.gmra.mxu0 %vm341_vm1, %v321_v16  ;;  %755 = vmatmul.mubr.msk.bf16.vlgmr.msra.gmra.mxu1 %vm341_vm1, %v321_v16 }
  0xe3   : > { %v392_v19 = vpop.f32.mrf.mxu0  ;;  %v433_v20 = vpop.f32.mrf.mxu1 }
  0xe4   : > { %v440_v23 = vadd.f32 %v392_v19, %v317_v17  ;;  %v442_v24 = vadd.f32 %v433_v20, %v319_v18 }
  0xe5   : > { %v394_v25 = vpop.f32.mrf.mxu0  ;;  %v435_v26 = vpop.f32.mrf.mxu1  ;;  %451 = sbr.rel (%p756_p5) target bundleno = 1370 (0x55a), region = 60 }
  0xe6   : > { %444 = vst [vmem:[#allocation2 + $0x10] sm:$0xff] %v440_v23  ;;  %446 = vst [vmem:[#allocation2 + $0x18] sm:$0xff] %v442_v24  ;;  %v441_v27 = vadd.f32 %v394_v25, %v318_v21  ;;  %v443_v28 = vadd.f32 %v435_v26, %v320_v22 }
  0xe7   : > { %v396_v29 = vpop.f32.mrf.mxu0  ;;  %v437_v30 = vpop.f32.mrf.mxu1 }
  0xe8   : > { %445 = vst [vmem:[#allocation2] sm:$0xff] %v441_v27  ;;  %447 = vst [vmem:[#allocation2 + $0x8] sm:$0xff] %v443_v28 }
  0xe9   : > { %v397_v31 = vpop.f32.mrf.mxu0  ;;  %v438_v32 = vpop.f32.mrf.mxu1 }
  0xea   : > { %v816_v53 = vmov 0   ;;  %v476_v57 = vld [vmem:[%s931_s4] sm:$0xff]  ;;  %vm536_vm2 = vcmask 1043456   ;;  %vm532_vm3 = vcmask 64512  }
  0xeb   : > { %781 = vset.pattern.permute.xlu1 %v816_v53  ;;  %581 = vmatprep.mubr.bf16.mxu0 %v816_v53  ;;  %v489_v60 = vld [vmem:[%s932_s5] sm:$0xff] }
  0xec   : > { %622 = vmatprep.mubr.bf16.mxu1 %v816_v53  ;;  %782 = vset.pattern.permute.xlu0 %v816_v53 }
  0xed   : > { %v452_v33 = vld [vmem:[#allocation2 + $0x10] sm:$0xff]  ;;  %v454_v35 = vld [vmem:[#allocation2 + $0x18] sm:$0xff] }
  0xef   : > { %v453_v34 = vld [vmem:[#allocation2] sm:$0xff]  ;;  %v455_v37 = vld [vmem:[#allocation2 + $0x8] sm:$0xff] }
  0xf0   : > { %v456_v36 = vadd.f32 %v453_v34, %v452_v33 }
  0xf2   : > { %v457_v38 = vadd.f32 %v456_v36, %v454_v35 }
  0xf4   : > { %v458_v39 = vadd.f32 %v457_v38, %v455_v37 }
  0xf6   : > { %459 = vadd.xlane.f32.xlu0 %v458_v39 }
 0x17f   : > { %v460_v40 = vpop.xlane.xlu0 %459 }
 0x180   : > { %v461_v41 = vmul.f32 0.001953125, %v460_v40 }
 0x182   : > { %v462_v42 = vsub.f32 %v452_v33, %v461_v41  ;;  %v463_v43 = vsub.f32 %v453_v34, %v461_v41  ;;  %v464_v44 = vsub.f32 %v454_v35, %v461_v41  ;;  %v465_v45 = vsub.f32 %v455_v37, %v461_v41  ;;  %v527_v33 = vld [vmem:[%s929_s2] sm:$0x3] }
 0x184   : > { %v466_v46 = vmul.f32 %v462_v42, %v462_v42  ;;  %v467_v47 = vmul.f32 %v463_v43, %v463_v43  ;;  %v468_v48 = vmul.f32 %v464_v44, %v464_v44  ;;  %v469_v50 = vmul.f32 %v465_v45, %v465_v45 }
 0x186   : > { %v470_v49 = vadd.f32 %v467_v47, %v466_v46 }
 0x188   : > { %v471_v51 = vadd.f32 %v470_v49, %v468_v48 }
 0x18a   : > { %v472_v52 = vadd.f32 %v471_v51, %v469_v50 }
 0x18c   : > { %473 = vadd.xlane.f32.xlu0 %v472_v52 }
 0x215   : > { %v474_v54 = vpop.xlane.xlu0 %473 }
 0x216   : > { %v475_v55 = vmul.f32 0.001953125, %v474_v54 }
 0x218   : > { %v477_v56 = vadd.f32 1e-05, %v475_v55 }
 0x21a   : > { %785 = vrsqrt.f32 %v477_v56 }
 0x227   : > { %v786_v58 = vpop.eup %785 }
 0x228   : > { %v479_v59 = vmul.f32 %v786_v58, %v476_v57 }
 0x22a   : > { %482 = vperm.xlu1 %781, %v479_v59  }
 0x22e   : > { %492 = vperm.xlu1 %781, %v489_v60  }
 0x2a5   : > { %v483_v61 = vpop.permute.xlu1 %482 }
 0x2a6   : > { %v485_v62 = vmul.f32 %v483_v61, %v462_v42  ;;  %v486_v63 = vmul.f32 %v483_v61, %v463_v43  ;;  %v487_v0 = vmul.f32 %v483_v61, %v464_v44  ;;  %v488_v1 = vmul.f32 %v483_v61, %v465_v45 }
 0x2a9   : > { %v493_v2 = vpop.permute.xlu1 %492 }
 0x2aa   : > { %v496_v3 = vadd.f32 %v493_v2, %v486_v63  ;;  %v498_v4 = vadd.f32 %v493_v2, %v488_v1  ;;  %v495_v5 = vadd.f32 %v493_v2, %v485_v62  ;;  %v497_v6 = vadd.f32 %v493_v2, %v487_v0  ;;  %v672_v2 = vld [vmem:[%s934_s7] sm:$0xf] }
 0x2ac   : > { %v758_v7 = vmul.f32 -1.442695, %v496_v3  ;;  %v760_v8 = vmul.f32 -1.442695, %v498_v4  ;;  %v757_v9 = vmul.f32 -1.442695, %v495_v5 }
 0x2ad   : > { %v759_v10 = vmul.f32 -1.442695, %v497_v6 }
 0x2ae   : > { %787 = vpow2.f32 %v758_v7 }
 0x2af   : > { %789 = vpow2.f32 %v760_v8 }
 0x2b0   : > { %791 = vpow2.f32 %v757_v9  ;;  %v682_v9 = vld [vmem:[%s930_s3] sm:$0xff] }
 0x2b1   : > { %793 = vpow2.f32 %v759_v10  ;;  %v683_v10 = vld [vmem:[%s930_s3 + $0x8] sm:$0xff] }
 0x2bb   : > { %v788_v11 = vpop.eup %787 }
 0x2bc   : > { %v790_v12 = vpop.eup %789  ;;  %v512_v13 = vadd.f32 1.0, %v788_v11  ;;  %v686_v11 = vcombine.high %v682_v9, %v682_v9 }
 0x2bd   : > { %v792_v14 = vpop.eup %791  ;;  %v514_v15 = vadd.f32 1.0, %v790_v12  ;;  %v687_v12 = vcombine.high %v683_v10, %v683_v10 }
 0x2be   : > { %v794_v16 = vpop.eup %793  ;;  %795 = vrcp.f32 %v512_v13  ;;  %v511_v17 = vadd.f32 1.0, %v792_v14 }
 0x2bf   : > { %797 = vrcp.f32 %v514_v15  ;;  %v513_v18 = vadd.f32 1.0, %v794_v16 }
 0x2c0   : > { %799 = vrcp.f32 %v511_v17 }
 0x2c1   : > { %801 = vrcp.f32 %v513_v18 }
 0x2cb   : > { %v796_v19 = vpop.eup %795 }
 0x2cc   : > { %v798_v20 = vpop.eup %797  ;;  %v524_v21 = vmul.f32 %v796_v19, %v496_v3 }
 0x2cd   : > { %v800_v22 = vpop.eup %799  ;;  %v526_v23 = vmul.f32 %v798_v20, %v498_v4 }
 0x2ce   : > { %v802_v24 = vpop.eup %801  ;;  %v529_v25 = vpack.c.bf16 %v524_v21, %v524_v21  ;;  %v523_v26 = vmul.f32 %v800_v22, %v495_v5 }
 0x2cf   : > { %v531_v27 = vpack.c.bf16 %v526_v23, %v526_v23  ;;  %v525_v28 = vmul.f32 %v802_v24, %v497_v6  ;;  %v659_v6 = vld [vmem:[%s933_s6] sm:$0xf] }
 0x2d0   : > { %761 = vmatprep.subr.msk.bf16.mxu0 %vm536_vm2, %v529_v25  ;;  %v528_v29 = vpack.c.bf16 %v523_v26, %v523_v26 }
 0x2d1   : > { %763 = vmatprep.subr.msk.bf16.mxu1 %vm536_vm2, %v531_v27  ;;  %v530_v30 = vpack.c.bf16 %v525_v28, %v525_v28 }
 0x2d2   : > { %v538_v31 = vsel %vm536_vm2, %v528_v29, 0 }
 0x2d3   : > { %564 = vmatpush1.bf16.msra.mxu0 %v538_v31  ;;  %v544_v32 = vsel %vm536_vm2, %v530_v30, 0 }
 0x2d4   : > { %605 = vmatpush1.bf16.msra.mxu1 %v544_v32 }
 0x2d6   : > { %762 = vmatmul.mubr.msk.bf16.vlgmr.msra.gmra.mxu0 %vm532_vm3, %v527_v33 }
 0x2d7   : > { %764 = vmatmul.mubr.msk.bf16.vlgmr.msra.gmra.mxu1 %vm532_vm3, %v527_v33 }
 0x396   : > { %v583_v34 = vpop.f32.mrf.mxu0 }
 0x397   : > { %v624_v35 = vpop.f32.mrf.mxu1  ;;  %v631_v37 = vsel %vm536_vm2, %v583_v34, 0.0 }
 0x398   : > { %v585_v36 = vpop.f32.mrf.mxu0  ;;  %v634_v38 = vsel %vm536_vm2, %v624_v35, 0.0 }
 0x399   : > { %v632_v39 = vsel %vm536_vm2, %v585_v36, 0.0  ;;  %v626_v40 = vpop.f32.mrf.mxu1 }
 0x39a   : > { %v633_v41 = vadd.f32 %v632_v39, %v631_v37  ;;  %v587_v42 = vpop.f32.mrf.mxu0  ;;  %v636_v46 = vsel %vm536_vm2, %v626_v40, 0.0 }
 0x39b   : > { %v628_v43 = vpop.f32.mrf.mxu1 }
 0x39c   : > { %v588_v44 = vpop.f32.mrf.mxu0  ;;  %v635_v45 = vadd.f32 %v634_v38, %v633_v41 }
 0x39d   : > { %v629_v47 = vpop.f32.mrf.mxu1 }
 0x39e   : > { %v637_v48 = vadd.f32 %v636_v46, %v635_v45 }
 0x3a0   : > { %638 = vadd.xlane.f32.xlu0 %v637_v48 }
 0x429   : > { %v639_v49 = vpop.xlane.xlu0 %638 }
 0x42a   : > { %v640_v50 = vmul.f32 0.001953125, %v639_v49 }
 0x42c   : > { %v641_v51 = vsub.f32 %v583_v34, %v640_v50  ;;  %v642_v52 = vsub.f32 %v585_v36, %v640_v50  ;;  %v643_v53 = vsub.f32 %v624_v35, %v640_v50  ;;  %v644_v54 = vsub.f32 %v626_v40, %v640_v50 }
 0x42e   : > { %v645_v55 = vmul.f32 %v641_v51, %v641_v51  ;;  %v646_v56 = vmul.f32 %v642_v52, %v642_v52  ;;  %v647_v57 = vmul.f32 %v643_v53, %v643_v53  ;;  %v648_v58 = vmul.f32 %v644_v54, %v644_v54 }
 0x430   : > { %v649_v59 = vsel %vm536_vm2, %v645_v55, 0.0  ;;  %v650_v60 = vsel %vm536_vm2, %v646_v56, 0.0  ;;  %v652_v62 = vsel %vm536_vm2, %v647_v57, 0.0  ;;  %v654_v0 = vsel %vm536_vm2, %v648_v58, 0.0 }
 0x431   : > { %v651_v61 = vadd.f32 %v650_v60, %v649_v59 }
 0x433   : > { %v653_v63 = vadd.f32 %v652_v62, %v651_v61 }
 0x435   : > { %v655_v1 = vadd.f32 %v654_v0, %v653_v63 }
 0x437   : > { %656 = vadd.xlane.f32.xlu1 %v655_v1 }
 0x448   : > { %675 = vperm.xlu1 %781, %v672_v2  }
 0x4c0   : > { %v657_v3 = vpop.xlane.xlu1 %656 }
 0x4c1   : > { %v658_v4 = vmul.f32 0.001953125, %v657_v3 }
 0x4c3   : > { %v660_v5 = vadd.f32 1e-05, %v658_v4 }
 0x4c4   : > { %v676_v18 = vpop.permute.xlu1 %675 }
 0x4c5   : > { %803 = vrsqrt.f32 %v660_v5 }
 0x4d2   : > { %v804_v7 = vpop.eup %803 }
 0x4d3   : > { %v662_v8 = vmul.f32 %v804_v7, %v659_v6 }
 0x4d5   : > { %665 = vperm.xlu0 %782, %v662_v8  }
 0x550   : > { %v666_v13 = vpop.permute.xlu0 %665 }
 0x551   : > { %v668_v14 = vmul.f32 %v666_v13, %v641_v51  ;;  %v669_v15 = vmul.f32 %v666_v13, %v642_v52  ;;  %v670_v16 = vmul.f32 %v666_v13, %v643_v53  ;;  %v671_v17 = vmul.f32 %v666_v13, %v644_v54 }
 0x553   : > { %v678_v19 = vadd.f32 %v676_v18, %v668_v14  ;;  %v679_v20 = vadd.f32 %v676_v18, %v669_v15  ;;  %v680_v21 = vadd.f32 %v676_v18, %v670_v16  ;;  %v681_v22 = vadd.f32 %v676_v18, %v671_v17 }
 0x555   : > { %v690_v23 = vadd.f32 %v682_v9, %v678_v19  ;;  %v691_v24 = vadd.f32 %v686_v11, %v679_v20  ;;  %v692_v25 = vadd.f32 %v683_v10, %v680_v21  ;;  %v693_v26 = vadd.f32 %v687_v12, %v681_v22 }
 0x557   : > { %v698_v27 = vcombine.low %v690_v23, %v691_v24  ;;  %v699_v28 = vcombine.low %v692_v25, %v693_v26 }
 0x559   : > { %702 = vst [vmem:[%s935_s8] sm:$0xff] %v698_v27  ;;  %703 = vst [vmem:[%s935_s8 + $0x8] sm:$0xff] %v699_v28 }
 0x55a PF: > { %s18_s27 = sadd.s32 1, %s811_s27  }
 0x55b   : > { %p15_p6 = scmp.ge.s32.totalorder %s18_s27, 11  }
 0x55d   :  { %17 = sbr.rel (!%p15_p6) target bundleno = 1 (0x1), region = 89 }

</bundles_post_ra>
